<compile_context>
chip_gen: v5e
topology: v5e:2x2
jax: 0.10.0
libtpu: 0.0.40
codegen_flags: <defaults>
</compile_context>

<pallas_src>
import math

import jax
import jax.numpy as jnp
import numpy as np
from jax.experimental import pallas as pl
from jax.experimental.pallas import tpu as pltpu


def _make_encoder_kernel(n_heads, tq, return_attn):
    """Builds the kernel body for one (batch, query-tile) grid step."""

    def kernel(x_ref, wqkv_ref, bqkv_ref, wo_ref, bo_ref,
               g1_ref, be1_ref, w1_ref, b1_ref, w2_ref, b2_ref,
               g2_ref, be2_ref, *out_and_scratch):
        if return_attn:
            out_ref, attn_ref, q_s, k_s, v_s = out_and_scratch
        else:
            out_ref, q_s, k_s, v_s = out_and_scratch
            attn_ref = None

        f32 = jnp.float32
        bf16 = jnp.bfloat16
        H = n_heads
        L = x_ref.shape[1]
        D = x_ref.shape[2]
        E = D // H
        eps = 1e-5

        qi = pl.program_id(1)

        # ---- fused Q/K/V projection for the whole sequence: once per batch ----
        @pl.when(qi == 0)
        def _():
            xf = x_ref[0].astype(bf16)                                    # (L, D)
            qkv = jnp.dot(xf, wqkv_ref[...], preferred_element_type=f32)
            qkv = qkv + bqkv_ref[...]                                     # (L, 3D)
            q_s[...] = qkv[:, :D].astype(bf16)       # Q already scaled by 1/sqrt(E)
            k_s[...] = qkv[:, D:2 * D].T.astype(bf16)  # K^T (D, L): one transpose/batch
            v_s[...] = qkv[:, 2 * D:].astype(bf16)

        # ---- this query tile ----
        row0 = pl.multiple_of(qi * tq, tq)
        xq = x_ref[0, pl.ds(row0, tq), :]                                 # (tq, D) f32
        qb = q_s[pl.ds(row0, tq), :]                                      # (tq, D) bf16

        # ---- per-head attention; head outputs stay in vregs (no scratch) ----
        heads = []
        for h in range(H):
            qh = qb[:, h * E:(h + 1) * E]                                 # (tq, E)
            kh = k_s[h * E:(h + 1) * E, :]                                # (E, L)
            vh = v_s[:, h * E:(h + 1) * E]                                # (L, E)
            s = jnp.dot(qh, kh, preferred_element_type=f32)               # (tq, L)
            s = s - jnp.max(s, axis=-1, keepdims=True)
            p = jnp.exp(s)
            p = p * pl.reciprocal(jnp.sum(p, axis=-1, keepdims=True), approx=True)
            if attn_ref is not None:
                attn_ref[0, h] = p.astype(attn_ref.dtype)
            heads.append(jnp.dot(p.astype(bf16), vh, preferred_element_type=f32))
        o = jnp.concatenate(heads, axis=-1)                               # (tq, D) f32

        new_x = jnp.dot(o.astype(bf16), wo_ref[...], preferred_element_type=f32)
        new_x = new_x + bo_ref[...]

        # ---- residual + LayerNorm1 (f32 VPU math; dropout = identity) ----
        x1 = xq + new_x
        mu = jnp.mean(x1, axis=-1, keepdims=True)
        var = jnp.mean((x1 - mu) ** 2, axis=-1, keepdims=True)
        xn = (x1 - mu) * jax.lax.rsqrt(var + eps)
        xn = xn * g1_ref[...] + be1_ref[...]

        # ---- position-wise FFN (conv1d k=1 -> relu -> conv1d k=1) ----
        y = jnp.dot(xn.astype(bf16), w1_ref[...], preferred_element_type=f32)
        y = jnp.maximum(y + b1_ref[...], 0.0)
        y = jnp.dot(y.astype(bf16), w2_ref[...], preferred_element_type=f32)
        y = y + b2_ref[...]

        # ---- residual + LayerNorm2; write straight to the output block ----
        z = xn + y
        mu2 = jnp.mean(z, axis=-1, keepdims=True)
        var2 = jnp.mean((z - mu2) ** 2, axis=-1, keepdims=True)
        zn = (z - mu2) * jax.lax.rsqrt(var2 + eps)
        zn = zn * g2_ref[...] + be2_ref[...]
        out_ref[0] = zn.astype(out_ref.dtype)

    return kernel


def _pick_q_tile(L, q_tile):
    """Largest multiple-of-8 tile <= q_tile that divides L; else the full sequence."""
    if L <= q_tile:
        return L
    start = q_tile - (q_tile % 8)
    for t in range(start, 7, -8):
        if L % t == 0:
            return t
    return L  # ragged-L fallback (full-sequence tile); avoid for very long L.


def encoder_layer_forward(x, params, n_heads, *, q_tile=256, return_attn=False):
    B, L, D = x.shape
    H = n_heads
    E = D // H
    d_ff = params["w1"].shape[1]
    scale = 1.0 / math.sqrt(E)

    tq = _pick_q_tile(L, q_tile)
    nq = L // tq

    bf16 = jnp.bfloat16
    f32 = jnp.float32
    # Fold the 1/sqrt(E) attention scale into Wq / bq (param transform, free at
    # runtime) and fuse Q/K/V into a single (D, 3D) projection.  Weights go to
    # bf16 for the MXU; biases / LayerNorm affine params stay f32.
    w_qkv = jnp.concatenate(
        [params["wq"] * scale, params["wk"], params["wv"]], axis=1).astype(bf16)
    b_qkv = jnp.concatenate(
        [params["bq"] * scale, params["bk"], params["bv"]], axis=1).astype(f32)
    wo = params["wo"].astype(bf16)
    w1 = params["w1"].astype(bf16)
    w2 = params["w2"].astype(bf16)

    def rep(shape):
        return pl.BlockSpec(shape, lambda b, qi: (0,) * len(shape))

    in_specs = [
        pl.BlockSpec((1, L, D), lambda b, qi: (b, 0, 0)),   # x (full seq per batch)
        rep((D, 3 * D)), rep((1, 3 * D)),                   # fused Wqkv, bqkv
        rep((D, D)), rep((1, D)),                           # wo, bo
        rep((1, D)), rep((1, D)),                           # gamma1, beta1
        rep((D, d_ff)), rep((1, d_ff)),                     # conv1 weight, bias
        rep((d_ff, D)), rep((1, D)),                        # conv2 weight, bias
        rep((1, D)), rep((1, D)),                           # gamma2, beta2
    ]

    out_specs = [pl.BlockSpec((1, tq, D), lambda b, qi: (b, qi, 0))]
    out_shape = [jax.ShapeDtypeStruct((B, L, D), x.dtype)]
    if return_attn:
        out_specs.append(pl.BlockSpec((1, H, tq, L), lambda b, qi: (b, 0, qi, 0)))
        out_shape.append(jax.ShapeDtypeStruct((B, H, L, L), jnp.bfloat16))

    scratch_shapes = [
        pltpu.VMEM((L, D), bf16),    # Q (whole sequence, pre-scaled)
        pltpu.VMEM((D, L), bf16),    # K^T (lane-dense along L)
        pltpu.VMEM((L, D), bf16),    # V
    ]

    # VMEM budget: every input/output block is double-buffered by Pallas (x2),
    # scratch is single-buffered; clamp to physical VMEM (64 MiB/TC on v7x).
    itemsize = jnp.dtype(x.dtype).itemsize
    blk_bytes = (
        2 * (3 * D * D + D * D + 2 * D * d_ff)           # bf16 weight blocks
        + 4 * (3 * D + 6 * D + d_ff)                     # f32 bias / LN blocks
        + itemsize * L * D                               # x block
        + itemsize * tq * D                              # out block
        + (2 * H * tq * L if return_attn else 0)         # bf16 attn block
    )
    scratch_bytes = 2 * (3 * L * D)                      # Q, K^T, V bf16 scratch
    needed = 2 * blk_bytes + scratch_bytes
    needed = int(needed * 1.25) + (2 << 20)              # compiler-internal headroom
    try:
        phys_vmem = pltpu.get_tpu_info().vmem_capacity_bytes
    except Exception:
        phys_vmem = 64 * 1024 * 1024                     # conservative v7x per-TC floor
    vmem_limit = min(max(needed, 32 * 1024 * 1024), phys_vmem - (2 << 20))

    kernel = _make_encoder_kernel(H, tq, return_attn)
    outs = pl.pallas_call(
        kernel,
        grid=(B, nq),
        in_specs=in_specs,
        out_specs=out_specs,
        out_shape=out_shape,
        scratch_shapes=scratch_shapes,
        compiler_params=pltpu.CompilerParams(
            dimension_semantics=("parallel", "arbitrary"),
            vmem_limit_bytes=vmem_limit),
    )(x, w_qkv, b_qkv, wo, params["bo"],
      params["g1"], params["be1"],
      w1, params["b1"], w2, params["b2"],
      params["g2"], params["be2"])

    if return_attn:
        return outs[0], outs[1]
    return outs[0], None


def reference_forward(x, p, H):
    """Pure-JAX f32 reference (mirrors the PyTorch forward in eval mode)."""
    B, L, D = x.shape
    E = D // H
    eps = 1e-5

    def ln(t, g, b):
        mu = jnp.mean(t, axis=-1, keepdims=True)
        var = jnp.mean((t - mu) ** 2, axis=-1, keepdims=True)
        return (t - mu) / jnp.sqrt(var + eps) * g + b

    q = (x @ p["wq"] + p["bq"]).reshape(B, L, H, E).transpose(0, 2, 1, 3)
    k = (x @ p["wk"] + p["bk"]).reshape(B, L, H, E).transpose(0, 2, 1, 3)
    v = (x @ p["wv"] + p["bv"]).reshape(B, L, H, E).transpose(0, 2, 1, 3)
    s = jnp.einsum("bhle,bhme->bhlm", q, k) / math.sqrt(E)
    attn = jax.nn.softmax(s, axis=-1)
    o = jnp.einsum("bhlm,bhme->bhle", attn, v).transpose(0, 2, 1, 3).reshape(B, L, D)
    new_x = o @ p["wo"] + p["bo"]
    xn = ln(x + new_x, p["g1"], p["be1"])
    y = jax.nn.relu(xn @ p["w1"] + p["b1"])
    y = y @ p["w2"] + p["b2"]
    return ln(xn + y, p["g2"], p["be2"]), attn


if __name__ == "__main__":
    B, L, D, H = 2, 16, 32, 4
    d_ff = 4 * D  # 128

    key = jax.random.PRNGKey(0)
    keys = jax.random.split(key, 16)

    def w(k, shape, scale=0.1):
        return jax.random.normal(k, shape, dtype=jnp.float32) * scale

    params = {
        "wq": w(keys[0], (D, D)), "bq": w(keys[1], (1, D)),
        "wk": w(keys[2], (D, D)), "bk": w(keys[3], (1, D)),
        "wv": w(keys[4], (D, D)), "bv": w(keys[5], (1, D)),
        "wo": w(keys[6], (D, D)), "bo": w(keys[7], (1, D)),
        "g1": jnp.ones((1, D), jnp.float32), "be1": jnp.zeros((1, D), jnp.float32),
        "w1": w(keys[8], (D, d_ff)), "b1": w(keys[9], (1, d_ff)),
        "w2": w(keys[10], (d_ff, D)), "b2": w(keys[11], (1, D)),
        "g2": jnp.ones((1, D), jnp.float32), "be2": jnp.zeros((1, D), jnp.float32),
    }

    x = jax.random.normal(keys[12], (B, L, D), dtype=jnp.float32)
    ref_out, ref_attn = reference_forward(x, params, H)

    # attn-returning variant, q_tile=8 -> 2 query tiles (exercises the tiled path).
    out, attn = encoder_layer_forward(x, params, H, q_tile=8, return_attn=True)
    out = jax.block_until_ready(out)
    attn = jax.block_until_ready(attn)

    # bf16 MXU operands / bf16 attn output / approx reciprocal -> loose tolerance.
    assert np.allclose(np.asarray(out), np.asarray(ref_out), rtol=2e-2, atol=2e-2)
    assert np.allclose(np.asarray(attn.astype(jnp.float32)), np.asarray(ref_attn),
                       rtol=2e-2, atol=2e-2)

    # Default path: no attention writeback, single full-sequence query tile.
    out2, _ = encoder_layer_forward(x, params, H)
    out2 = jax.block_until_ready(out2)
    assert np.allclose(np.asarray(out2), np.asarray(ref_out), rtol=2e-2, atol=2e-2)

    print("KERNEL_OK")
</pallas_src>

<mosaic_0001>
module attributes {stable_mosaic.version = 11 : i64} {
  func.func @kernel(%arg0: i32, %arg1: i32, %arg2: memref<1x16x32xf32, #tpu.memory_space<vmem>>, %arg3: memref<32x96xbf16, #tpu.memory_space<vmem>>, %arg4: memref<1x96xf32, #tpu.memory_space<vmem>>, %arg5: memref<32x32xbf16, #tpu.memory_space<vmem>>, %arg6: memref<1x32xf32, #tpu.memory_space<vmem>>, %arg7: memref<1x32xf32, #tpu.memory_space<vmem>>, %arg8: memref<1x32xf32, #tpu.memory_space<vmem>>, %arg9: memref<32x128xbf16, #tpu.memory_space<vmem>>, %arg10: memref<1x128xf32, #tpu.memory_space<vmem>>, %arg11: memref<128x32xbf16, #tpu.memory_space<vmem>>, %arg12: memref<1x32xf32, #tpu.memory_space<vmem>>, %arg13: memref<1x32xf32, #tpu.memory_space<vmem>>, %arg14: memref<1x32xf32, #tpu.memory_space<vmem>>, %arg15: memref<1x8x32xf32, #tpu.memory_space<vmem>>, %arg16: memref<1x4x8x16xbf16, #tpu.memory_space<vmem>>, %arg17: memref<16x32xbf16, #tpu.memory_space<vmem>>, %arg18: memref<32x16xbf16, #tpu.memory_space<vmem>>, %arg19: memref<16x32xbf16, #tpu.memory_space<vmem>>) attributes {dimension_semantics = [#tpu.dimension_semantics<parallel>, #tpu.dimension_semantics<arbitrary>], iteration_bounds = array<i64: 2, 2>, scalar_prefetch = 0 : i64, scratch_operands = 3 : i64, tpu.core_type = #tpu.core_type<tc>, window_params = [{transform_indices = @transform_0, window_bounds = array<i64: 1, 16, 32>}, {pipeline_mode = #tpu.pipeline_mode<synchronous>, transform_indices = @transform_1, window_bounds = array<i64: 32, 96>}, {pipeline_mode = #tpu.pipeline_mode<synchronous>, transform_indices = @transform_2, window_bounds = array<i64: 1, 96>}, {pipeline_mode = #tpu.pipeline_mode<synchronous>, transform_indices = @transform_3, window_bounds = array<i64: 32, 32>}, {pipeline_mode = #tpu.pipeline_mode<synchronous>, transform_indices = @transform_4, window_bounds = array<i64: 1, 32>}, {pipeline_mode = #tpu.pipeline_mode<synchronous>, transform_indices = @transform_5, window_bounds = array<i64: 1, 32>}, {pipeline_mode = #tpu.pipeline_mode<synchronous>, transform_indices = @transform_6, window_bounds = array<i64: 1, 32>}, {pipeline_mode = #tpu.pipeline_mode<synchronous>, transform_indices = @transform_7, window_bounds = array<i64: 32, 128>}, {pipeline_mode = #tpu.pipeline_mode<synchronous>, transform_indices = @transform_8, window_bounds = array<i64: 1, 128>}, {pipeline_mode = #tpu.pipeline_mode<synchronous>, transform_indices = @transform_9, window_bounds = array<i64: 128, 32>}, {pipeline_mode = #tpu.pipeline_mode<synchronous>, transform_indices = @transform_10, window_bounds = array<i64: 1, 32>}, {pipeline_mode = #tpu.pipeline_mode<synchronous>, transform_indices = @transform_11, window_bounds = array<i64: 1, 32>}, {pipeline_mode = #tpu.pipeline_mode<synchronous>, transform_indices = @transform_12, window_bounds = array<i64: 1, 32>}, {transform_indices = @transform_13, window_bounds = array<i64: 1, 8, 32>}, {transform_indices = @transform_14, window_bounds = array<i64: 1, 4, 8, 16>}]} {
    %c0_i32 = arith.constant 0 : i32
    %0 = arith.cmpi eq, %arg1, %c0_i32 : i32
    %1 = arith.extui %0 : i1 to i32
    %c0_i32_0 = arith.constant 0 : i32
    %2 = arith.cmpi ne, %1, %c0_i32_0 : i32
    scf.if %2 {
      %c0_81 = arith.constant 0 : index
      %c0_82 = arith.constant 0 : index
      %c0_83 = arith.constant 0 : index
      %164 = vector.load %arg2[%c0_81, %c0_82, %c0_83] : memref<1x16x32xf32, #tpu.memory_space<vmem>>, vector<1x16x32xf32>
      %165 = vector.shape_cast %164 : vector<1x16x32xf32> to vector<16x32xf32>
      %166 = arith.truncf %165 : vector<16x32xf32> to vector<16x32xbf16>
      %c0_84 = arith.constant 0 : index
      %c0_85 = arith.constant 0 : index
      %167 = vector.load %arg3[%c0_84, %c0_85] : memref<32x96xbf16, #tpu.memory_space<vmem>>, vector<32x96xbf16>
      %cst_86 = arith.constant dense<0.000000e+00> : vector<16x96xf32>
      %168 = tpu.matmul %166, %167, %cst_86 {dimension_numbers = #tpu.dot_dimension_numbers<[1], [0], [0], [1], [0, 0, 1, 1], [], []>} : vector<16x32xbf16>, vector<32x96xbf16>, vector<16x96xf32> -> vector<16x96xf32>
      %c0_87 = arith.constant 0 : index
      %c0_88 = arith.constant 0 : index
      %169 = vector.load %arg4[%c0_87, %c0_88] : memref<1x96xf32, #tpu.memory_space<vmem>>, vector<1x96xf32>
      %170 = vector.broadcast %169 : vector<1x96xf32> to vector<16x96xf32>
      %171 = arith.addf %168, %170 : vector<16x96xf32>
      %172 = vector.extract_strided_slice %171 {offsets = [0, 0], sizes = [16, 32], strides = [1, 1]} : vector<16x96xf32> to vector<16x32xf32>
      %173 = arith.truncf %172 : vector<16x32xf32> to vector<16x32xbf16>
      %c0_89 = arith.constant 0 : index
      %c0_90 = arith.constant 0 : index
      %174 = vector.load %arg17[%c0_89, %c0_90] : memref<16x32xbf16, #tpu.memory_space<vmem>>, vector<16x32xbf16>
      tpu.vector_store %arg17[%c0_89, %c0_90], %173 {strides = array<i32>} : memref<16x32xbf16, #tpu.memory_space<vmem>>, vector<16x32xbf16>,
      %175 = vector.extract_strided_slice %171 {offsets = [0, 32], sizes = [16, 32], strides = [1, 1]} : vector<16x96xf32> to vector<16x32xf32>
      %176 = tpu.transpose %175, [1, 0] : vector<16x32xf32> -> vector<32x16xf32>
      %177 = arith.truncf %176 : vector<32x16xf32> to vector<32x16xbf16>
      %c0_91 = arith.constant 0 : index
      %c0_92 = arith.constant 0 : index
      %178 = vector.load %arg18[%c0_91, %c0_92] : memref<32x16xbf16, #tpu.memory_space<vmem>>, vector<32x16xbf16>
      tpu.vector_store %arg18[%c0_91, %c0_92], %177 {strides = array<i32>} : memref<32x16xbf16, #tpu.memory_space<vmem>>, vector<32x16xbf16>,
      %179 = vector.extract_strided_slice %171 {offsets = [0, 64], sizes = [16, 32], strides = [1, 1]} : vector<16x96xf32> to vector<16x32xf32>
      %180 = arith.truncf %179 : vector<16x32xf32> to vector<16x32xbf16>
      %c0_93 = arith.constant 0 : index
      %c0_94 = arith.constant 0 : index
      %181 = vector.load %arg19[%c0_93, %c0_94] : memref<16x32xbf16, #tpu.memory_space<vmem>>, vector<16x32xbf16>
      tpu.vector_store %arg19[%c0_93, %c0_94], %180 {strides = array<i32>} : memref<16x32xbf16, #tpu.memory_space<vmem>>, vector<16x32xbf16>,
    } else {
    }
    %c8_i32 = arith.constant 8 : i32
    %3 = arith.muli %arg1, %c8_i32 : i32
    %4 = tpu.assume_multiple %3, 8 : i32
    %c0 = arith.constant 0 : index
    %5 = arith.index_cast %4 : i32 to index
    %c0_1 = arith.constant 0 : index
    %6 = vector.load %arg2[%c0, %5, %c0_1] : memref<1x16x32xf32, #tpu.memory_space<vmem>>, vector<1x8x32xf32>
    %7 = vector.shape_cast %6 : vector<1x8x32xf32> to vector<8x32xf32>
    %8 = arith.index_cast %4 : i32 to index
    %c0_2 = arith.constant 0 : index
    %9 = vector.load %arg17[%8, %c0_2] : memref<16x32xbf16, #tpu.memory_space<vmem>>, vector<8x32xbf16>
    %10 = vector.extract_strided_slice %9 {offsets = [0, 0], sizes = [8, 8], strides = [1, 1]} : vector<8x32xbf16> to vector<8x8xbf16>
    %c0_3 = arith.constant 0 : index
    %c0_4 = arith.constant 0 : index
    %11 = vector.load %arg18[%c0_3, %c0_4] : memref<32x16xbf16, #tpu.memory_space<vmem>>, vector<8x16xbf16>
    %c0_5 = arith.constant 0 : index
    %c0_6 = arith.constant 0 : index
    %12 = vector.load %arg19[%c0_5, %c0_6] : memref<16x32xbf16, #tpu.memory_space<vmem>>, vector<16x8xbf16>
    %cst = arith.constant dense<0.000000e+00> : vector<8x16xf32>
    %13 = tpu.matmul %10, %11, %cst {dimension_numbers = #tpu.dot_dimension_numbers<[1], [0], [0], [1], [0, 0, 1, 1], [], []>} : vector<8x8xbf16>, vector<8x16xbf16>, vector<8x16xf32> -> vector<8x16xf32>
    %cst_7 = arith.constant dense<0xFF800000> : vector<8xf32>
    %14 = vector.multi_reduction <maximumf>, %13, %cst_7 [1] : vector<8x16xf32> to vector<8xf32>
    %15 = vector.shape_cast %14 : vector<8xf32> to vector<8x1xf32>
    %16 = vector.broadcast %15 : vector<8x1xf32> to vector<8x16xf32>
    %17 = arith.subf %13, %16 : vector<8x16xf32>
    %18 = math.exp %17 : vector<8x16xf32>
    %cst_8 = arith.constant dense<0.000000e+00> : vector<8xf32>
    %19 = vector.multi_reduction <add>, %18, %cst_8 [1] : vector<8x16xf32> to vector<8xf32>
    %20 = vector.shape_cast %19 : vector<8xf32> to vector<8x1xf32>
    %21 = tpu.reciprocal %20 {approx = true} : vector<8x1xf32> -> vector<8x1xf32>
    %22 = vector.broadcast %21 : vector<8x1xf32> to vector<8x16xf32>
    %23 = arith.mulf %18, %22 : vector<8x16xf32>
    %24 = arith.truncf %23 : vector<8x16xf32> to vector<8x16xbf16>
    %c0_9 = arith.constant 0 : index
    %c0_10 = arith.constant 0 : index
    %c0_11 = arith.constant 0 : index
    %c0_12 = arith.constant 0 : index
    %25 = vector.load %arg16[%c0_9, %c0_10, %c0_11, %c0_12] : memref<1x4x8x16xbf16, #tpu.memory_space<vmem>>, vector<1x1x8x16xbf16>
    %26 = vector.shape_cast %25 : vector<1x1x8x16xbf16> to vector<8x16xbf16>
    %27 = vector.shape_cast %24 : vector<8x16xbf16> to vector<1x1x8x16xbf16>
    tpu.vector_store %arg16[%c0_9, %c0_10, %c0_11, %c0_12], %27 {strides = array<i32>} : memref<1x4x8x16xbf16, #tpu.memory_space<vmem>>, vector<1x1x8x16xbf16>,
    %28 = arith.truncf %23 : vector<8x16xf32> to vector<8x16xbf16>
    %cst_13 = arith.constant dense<0.000000e+00> : vector<8x8xf32>
    %29 = tpu.matmul %28, %12, %cst_13 {dimension_numbers = #tpu.dot_dimension_numbers<[1], [0], [0], [1], [0, 0, 1, 1], [], []>} : vector<8x16xbf16>, vector<16x8xbf16>, vector<8x8xf32> -> vector<8x8xf32>
    %30 = vector.extract_strided_slice %9 {offsets = [0, 8], sizes = [8, 8], strides = [1, 1]} : vector<8x32xbf16> to vector<8x8xbf16>
    %c8 = arith.constant 8 : index
    %c0_14 = arith.constant 0 : index
    %31 = vector.load %arg18[%c8, %c0_14] : memref<32x16xbf16, #tpu.memory_space<vmem>>, vector<8x16xbf16>
    %c0_15 = arith.constant 0 : index
    %c8_16 = arith.constant 8 : index
    %32 = vector.load %arg19[%c0_15, %c8_16] : memref<16x32xbf16, #tpu.memory_space<vmem>>, vector<16x8xbf16>
    %cst_17 = arith.constant dense<0.000000e+00> : vector<8x16xf32>
    %33 = tpu.matmul %30, %31, %cst_17 {dimension_numbers = #tpu.dot_dimension_numbers<[1], [0], [0], [1], [0, 0, 1, 1], [], []>} : vector<8x8xbf16>, vector<8x16xbf16>, vector<8x16xf32> -> vector<8x16xf32>
    %cst_18 = arith.constant dense<0xFF800000> : vector<8xf32>
    %34 = vector.multi_reduction <maximumf>, %33, %cst_18 [1] : vector<8x16xf32> to vector<8xf32>
    %35 = vector.shape_cast %34 : vector<8xf32> to vector<8x1xf32>
    %36 = vector.broadcast %35 : vector<8x1xf32> to vector<8x16xf32>
    %37 = arith.subf %33, %36 : vector<8x16xf32>
    %38 = math.exp %37 : vector<8x16xf32>
    %cst_19 = arith.constant dense<0.000000e+00> : vector<8xf32>
    %39 = vector.multi_reduction <add>, %38, %cst_19 [1] : vector<8x16xf32> to vector<8xf32>
    %40 = vector.shape_cast %39 : vector<8xf32> to vector<8x1xf32>
    %41 = tpu.reciprocal %40 {approx = true} : vector<8x1xf32> -> vector<8x1xf32>
    %42 = vector.broadcast %41 : vector<8x1xf32> to vector<8x16xf32>
    %43 = arith.mulf %38, %42 : vector<8x16xf32>
    %44 = arith.truncf %43 : vector<8x16xf32> to vector<8x16xbf16>
    %c0_20 = arith.constant 0 : index
    %c1 = arith.constant 1 : index
    %c0_21 = arith.constant 0 : index
    %c0_22 = arith.constant 0 : index
    %45 = vector.load %arg16[%c0_20, %c1, %c0_21, %c0_22] : memref<1x4x8x16xbf16, #tpu.memory_space<vmem>>, vector<1x1x8x16xbf16>
    %46 = vector.shape_cast %45 : vector<1x1x8x16xbf16> to vector<8x16xbf16>
    %47 = vector.shape_cast %44 : vector<8x16xbf16> to vector<1x1x8x16xbf16>
    tpu.vector_store %arg16[%c0_20, %c1, %c0_21, %c0_22], %47 {strides = array<i32>} : memref<1x4x8x16xbf16, #tpu.memory_space<vmem>>, vector<1x1x8x16xbf16>,
    %48 = arith.truncf %43 : vector<8x16xf32> to vector<8x16xbf16>
    %cst_23 = arith.constant dense<0.000000e+00> : vector<8x8xf32>
    %49 = tpu.matmul %48, %32, %cst_23 {dimension_numbers = #tpu.dot_dimension_numbers<[1], [0], [0], [1], [0, 0, 1, 1], [], []>} : vector<8x16xbf16>, vector<16x8xbf16>, vector<8x8xf32> -> vector<8x8xf32>
    %50 = vector.extract_strided_slice %9 {offsets = [0, 16], sizes = [8, 8], strides = [1, 1]} : vector<8x32xbf16> to vector<8x8xbf16>
    %c16 = arith.constant 16 : index
    %c0_24 = arith.constant 0 : index
    %51 = vector.load %arg18[%c16, %c0_24] : memref<32x16xbf16, #tpu.memory_space<vmem>>, vector<8x16xbf16>
    %c0_25 = arith.constant 0 : index
    %c16_26 = arith.constant 16 : index
    %52 = vector.load %arg19[%c0_25, %c16_26] : memref<16x32xbf16, #tpu.memory_space<vmem>>, vector<16x8xbf16>
    %cst_27 = arith.constant dense<0.000000e+00> : vector<8x16xf32>
    %53 = tpu.matmul %50, %51, %cst_27 {dimension_numbers = #tpu.dot_dimension_numbers<[1], [0], [0], [1], [0, 0, 1, 1], [], []>} : vector<8x8xbf16>, vector<8x16xbf16>, vector<8x16xf32> -> vector<8x16xf32>
    %cst_28 = arith.constant dense<0xFF800000> : vector<8xf32>
    %54 = vector.multi_reduction <maximumf>, %53, %cst_28 [1] : vector<8x16xf32> to vector<8xf32>
    %55 = vector.shape_cast %54 : vector<8xf32> to vector<8x1xf32>
    %56 = vector.broadcast %55 : vector<8x1xf32> to vector<8x16xf32>
    %57 = arith.subf %53, %56 : vector<8x16xf32>
    %58 = math.exp %57 : vector<8x16xf32>
    %cst_29 = arith.constant dense<0.000000e+00> : vector<8xf32>
    %59 = vector.multi_reduction <add>, %58, %cst_29 [1] : vector<8x16xf32> to vector<8xf32>
    %60 = vector.shape_cast %59 : vector<8xf32> to vector<8x1xf32>
    %61 = tpu.reciprocal %60 {approx = true} : vector<8x1xf32> -> vector<8x1xf32>
    %62 = vector.broadcast %61 : vector<8x1xf32> to vector<8x16xf32>
    %63 = arith.mulf %58, %62 : vector<8x16xf32>
    %64 = arith.truncf %63 : vector<8x16xf32> to vector<8x16xbf16>
    %c0_30 = arith.constant 0 : index
    %c2 = arith.constant 2 : index
    %c0_31 = arith.constant 0 : index
    %c0_32 = arith.constant 0 : index
    %65 = vector.load %arg16[%c0_30, %c2, %c0_31, %c0_32] : memref<1x4x8x16xbf16, #tpu.memory_space<vmem>>, vector<1x1x8x16xbf16>
    %66 = vector.shape_cast %65 : vector<1x1x8x16xbf16> to vector<8x16xbf16>
    %67 = vector.shape_cast %64 : vector<8x16xbf16> to vector<1x1x8x16xbf16>
    tpu.vector_store %arg16[%c0_30, %c2, %c0_31, %c0_32], %67 {strides = array<i32>} : memref<1x4x8x16xbf16, #tpu.memory_space<vmem>>, vector<1x1x8x16xbf16>,
    %68 = arith.truncf %63 : vector<8x16xf32> to vector<8x16xbf16>
    %cst_33 = arith.constant dense<0.000000e+00> : vector<8x8xf32>
    %69 = tpu.matmul %68, %52, %cst_33 {dimension_numbers = #tpu.dot_dimension_numbers<[1], [0], [0], [1], [0, 0, 1, 1], [], []>} : vector<8x16xbf16>, vector<16x8xbf16>, vector<8x8xf32> -> vector<8x8xf32>
    %70 = vector.extract_strided_slice %9 {offsets = [0, 24], sizes = [8, 8], strides = [1, 1]} : vector<8x32xbf16> to vector<8x8xbf16>
    %c24 = arith.constant 24 : index
    %c0_34 = arith.constant 0 : index
    %71 = vector.load %arg18[%c24, %c0_34] : memref<32x16xbf16, #tpu.memory_space<vmem>>, vector<8x16xbf16>
    %c0_35 = arith.constant 0 : index
    %c24_36 = arith.constant 24 : index
    %72 = vector.load %arg19[%c0_35, %c24_36] : memref<16x32xbf16, #tpu.memory_space<vmem>>, vector<16x8xbf16>
    %cst_37 = arith.constant dense<0.000000e+00> : vector<8x16xf32>
    %73 = tpu.matmul %70, %71, %cst_37 {dimension_numbers = #tpu.dot_dimension_numbers<[1], [0], [0], [1], [0, 0, 1, 1], [], []>} : vector<8x8xbf16>, vector<8x16xbf16>, vector<8x16xf32> -> vector<8x16xf32>
    %cst_38 = arith.constant dense<0xFF800000> : vector<8xf32>
    %74 = vector.multi_reduction <maximumf>, %73, %cst_38 [1] : vector<8x16xf32> to vector<8xf32>
    %75 = vector.shape_cast %74 : vector<8xf32> to vector<8x1xf32>
    %76 = vector.broadcast %75 : vector<8x1xf32> to vector<8x16xf32>
    %77 = arith.subf %73, %76 : vector<8x16xf32>
    %78 = math.exp %77 : vector<8x16xf32>
    %cst_39 = arith.constant dense<0.000000e+00> : vector<8xf32>
    %79 = vector.multi_reduction <add>, %78, %cst_39 [1] : vector<8x16xf32> to vector<8xf32>
    %80 = vector.shape_cast %79 : vector<8xf32> to vector<8x1xf32>
    %81 = tpu.reciprocal %80 {approx = true} : vector<8x1xf32> -> vector<8x1xf32>
    %82 = vector.broadcast %81 : vector<8x1xf32> to vector<8x16xf32>
    %83 = arith.mulf %78, %82 : vector<8x16xf32>
    %84 = arith.truncf %83 : vector<8x16xf32> to vector<8x16xbf16>
    %c0_40 = arith.constant 0 : index
    %c3 = arith.constant 3 : index
    %c0_41 = arith.constant 0 : index
    %c0_42 = arith.constant 0 : index
    %85 = vector.load %arg16[%c0_40, %c3, %c0_41, %c0_42] : memref<1x4x8x16xbf16, #tpu.memory_space<vmem>>, vector<1x1x8x16xbf16>
    %86 = vector.shape_cast %85 : vector<1x1x8x16xbf16> to vector<8x16xbf16>
    %87 = vector.shape_cast %84 : vector<8x16xbf16> to vector<1x1x8x16xbf16>
    tpu.vector_store %arg16[%c0_40, %c3, %c0_41, %c0_42], %87 {strides = array<i32>} : memref<1x4x8x16xbf16, #tpu.memory_space<vmem>>, vector<1x1x8x16xbf16>,
    %88 = arith.truncf %83 : vector<8x16xf32> to vector<8x16xbf16>
    %cst_43 = arith.constant dense<0.000000e+00> : vector<8x8xf32>
    %89 = tpu.matmul %88, %72, %cst_43 {dimension_numbers = #tpu.dot_dimension_numbers<[1], [0], [0], [1], [0, 0, 1, 1], [], []>} : vector<8x16xbf16>, vector<16x8xbf16>, vector<8x8xf32> -> vector<8x8xf32>
    %90 = tpu.concatenate %29, %49, %69, %89 in 1 : vector<8x8xf32>, vector<8x8xf32>, vector<8x8xf32>, vector<8x8xf32> -> vector<8x32xf32>
    %91 = arith.truncf %90 : vector<8x32xf32> to vector<8x32xbf16>
    %c0_44 = arith.constant 0 : index
    %c0_45 = arith.constant 0 : index
    %92 = vector.load %arg5[%c0_44, %c0_45] : memref<32x32xbf16, #tpu.memory_space<vmem>>, vector<32x32xbf16>
    %cst_46 = arith.constant dense<0.000000e+00> : vector<8x32xf32>
    %93 = tpu.matmul %91, %92, %cst_46 {dimension_numbers = #tpu.dot_dimension_numbers<[1], [0], [0], [1], [0, 0, 1, 1], [], []>} : vector<8x32xbf16>, vector<32x32xbf16>, vector<8x32xf32> -> vector<8x32xf32>
    %c0_47 = arith.constant 0 : index
    %c0_48 = arith.constant 0 : index
    %94 = vector.load %arg6[%c0_47, %c0_48] : memref<1x32xf32, #tpu.memory_space<vmem>>, vector<1x32xf32>
    %95 = vector.broadcast %94 : vector<1x32xf32> to vector<8x32xf32>
    %96 = arith.addf %93, %95 : vector<8x32xf32>
    %97 = arith.addf %7, %96 : vector<8x32xf32>
    %cst_49 = arith.constant dense<0.000000e+00> : vector<8xf32>
    %98 = vector.multi_reduction <add>, %97, %cst_49 [1] : vector<8x32xf32> to vector<8xf32>
    %99 = vector.shape_cast %98 : vector<8xf32> to vector<8x1xf32>
    %cst_50 = arith.constant 3.200000e+01 : f32
    %100 = vector.broadcast %cst_50 : f32 to vector<8x1xf32>
    %101 = arith.divf %99, %100 : vector<8x1xf32>
    %102 = vector.broadcast %101 : vector<8x1xf32> to vector<8x32xf32>
    %103 = arith.subf %97, %102 : vector<8x32xf32>
    %104 = arith.mulf %103, %103 : vector<8x32xf32>
    %cst_51 = arith.constant dense<0.000000e+00> : vector<8xf32>
    %105 = vector.multi_reduction <add>, %104, %cst_51 [1] : vector<8x32xf32> to vector<8xf32>
    %106 = vector.shape_cast %105 : vector<8xf32> to vector<8x1xf32>
    %cst_52 = arith.constant 3.200000e+01 : f32
    %107 = vector.broadcast %cst_52 : f32 to vector<8x1xf32>
    %108 = arith.divf %106, %107 : vector<8x1xf32>
    %109 = vector.broadcast %101 : vector<8x1xf32> to vector<8x32xf32>
    %110 = arith.subf %97, %109 : vector<8x32xf32>
    %cst_53 = arith.constant 9.99999974E-6 : f32
    %111 = vector.broadcast %cst_53 : f32 to vector<8x1xf32>
    %112 = arith.addf %108, %111 : vector<8x1xf32>
    %113 = math.rsqrt %112 : vector<8x1xf32>
    %114 = vector.broadcast %113 : vector<8x1xf32> to vector<8x32xf32>
    %115 = arith.mulf %110, %114 : vector<8x32xf32>
    %c0_54 = arith.constant 0 : index
    %c0_55 = arith.constant 0 : index
    %116 = vector.load %arg7[%c0_54, %c0_55] : memref<1x32xf32, #tpu.memory_space<vmem>>, vector<1x32xf32>
    %117 = vector.broadcast %116 : vector<1x32xf32> to vector<8x32xf32>
    %118 = arith.mulf %115, %117 : vector<8x32xf32>
    %c0_56 = arith.constant 0 : index
    %c0_57 = arith.constant 0 : index
    %119 = vector.load %arg8[%c0_56, %c0_57] : memref<1x32xf32, #tpu.memory_space<vmem>>, vector<1x32xf32>
    %120 = vector.broadcast %119 : vector<1x32xf32> to vector<8x32xf32>
    %121 = arith.addf %118, %120 : vector<8x32xf32>
    %122 = arith.truncf %121 : vector<8x32xf32> to vector<8x32xbf16>
    %c0_58 = arith.constant 0 : index
    %c0_59 = arith.constant 0 : index
    %123 = vector.load %arg9[%c0_58, %c0_59] : memref<32x128xbf16, #tpu.memory_space<vmem>>, vector<32x128xbf16>
    %cst_60 = arith.constant dense<0.000000e+00> : vector<8x128xf32>
    %124 = tpu.matmul %122, %123, %cst_60 {dimension_numbers = #tpu.dot_dimension_numbers<[1], [0], [0], [1], [0, 0, 1, 1], [], []>} : vector<8x32xbf16>, vector<32x128xbf16>, vector<8x128xf32> -> vector<8x128xf32>
    %c0_61 = arith.constant 0 : index
    %c0_62 = arith.constant 0 : index
    %125 = vector.load %arg10[%c0_61, %c0_62] : memref<1x128xf32, #tpu.memory_space<vmem>>, vector<1x128xf32>
    %126 = vector.broadcast %125 : vector<1x128xf32> to vector<8x128xf32>
    %127 = arith.addf %124, %126 : vector<8x128xf32>
    %cst_63 = arith.constant 0.000000e+00 : f32
    %128 = vector.broadcast %cst_63 : f32 to vector<8x128xf32>
    %129 = arith.maximumf %127, %128 : vector<8x128xf32>
    %130 = arith.truncf %129 : vector<8x128xf32> to vector<8x128xbf16>
    %c0_64 = arith.constant 0 : index
    %c0_65 = arith.constant 0 : index
    %131 = vector.load %arg11[%c0_64, %c0_65] : memref<128x32xbf16, #tpu.memory_space<vmem>>, vector<128x32xbf16>
    %cst_66 = arith.constant dense<0.000000e+00> : vector<8x32xf32>
    %132 = tpu.matmul %130, %131, %cst_66 {dimension_numbers = #tpu.dot_dimension_numbers<[1], [0], [0], [1], [0, 0, 1, 1], [], []>} : vector<8x128xbf16>, vector<128x32xbf16>, vector<8x32xf32> -> vector<8x32xf32>
    %c0_67 = arith.constant 0 : index
    %c0_68 = arith.constant 0 : index
    %133 = vector.load %arg12[%c0_67, %c0_68] : memref<1x32xf32, #tpu.memory_space<vmem>>, vector<1x32xf32>
    %134 = vector.broadcast %133 : vector<1x32xf32> to vector<8x32xf32>
    %135 = arith.addf %132, %134 : vector<8x32xf32>
    %136 = arith.addf %121, %135 : vector<8x32xf32>
    %cst_69 = arith.constant dense<0.000000e+00> : vector<8xf32>
    %137 = vector.multi_reduction <add>, %136, %cst_69 [1] : vector<8x32xf32> to vector<8xf32>
    %138 = vector.shape_cast %137 : vector<8xf32> to vector<8x1xf32>
    %cst_70 = arith.constant 3.200000e+01 : f32
    %139 = vector.broadcast %cst_70 : f32 to vector<8x1xf32>
    %140 = arith.divf %138, %139 : vector<8x1xf32>
    %141 = vector.broadcast %140 : vector<8x1xf32> to vector<8x32xf32>
    %142 = arith.subf %136, %141 : vector<8x32xf32>
    %143 = arith.mulf %142, %142 : vector<8x32xf32>
    %cst_71 = arith.constant dense<0.000000e+00> : vector<8xf32>
    %144 = vector.multi_reduction <add>, %143, %cst_71 [1] : vector<8x32xf32> to vector<8xf32>
    %145 = vector.shape_cast %144 : vector<8xf32> to vector<8x1xf32>
    %cst_72 = arith.constant 3.200000e+01 : f32
    %146 = vector.broadcast %cst_72 : f32 to vector<8x1xf32>
    %147 = arith.divf %145, %146 : vector<8x1xf32>
    %148 = vector.broadcast %140 : vector<8x1xf32> to vector<8x32xf32>
    %149 = arith.subf %136, %148 : vector<8x32xf32>
    %cst_73 = arith.constant 9.99999974E-6 : f32
    %150 = vector.broadcast %cst_73 : f32 to vector<8x1xf32>
    %151 = arith.addf %147, %150 : vector<8x1xf32>
    %152 = math.rsqrt %151 : vector<8x1xf32>
    %153 = vector.broadcast %152 : vector<8x1xf32> to vector<8x32xf32>
    %154 = arith.mulf %149, %153 : vector<8x32xf32>
    %c0_74 = arith.constant 0 : index
    %c0_75 = arith.constant 0 : index
    %155 = vector.load %arg13[%c0_74, %c0_75] : memref<1x32xf32, #tpu.memory_space<vmem>>, vector<1x32xf32>
    %156 = vector.broadcast %155 : vector<1x32xf32> to vector<8x32xf32>
    %157 = arith.mulf %154, %156 : vector<8x32xf32>
    %c0_76 = arith.constant 0 : index
    %c0_77 = arith.constant 0 : index
    %158 = vector.load %arg14[%c0_76, %c0_77] : memref<1x32xf32, #tpu.memory_space<vmem>>, vector<1x32xf32>
    %159 = vector.broadcast %158 : vector<1x32xf32> to vector<8x32xf32>
    %160 = arith.addf %157, %159 : vector<8x32xf32>
    %c0_78 = arith.constant 0 : index
    %c0_79 = arith.constant 0 : index
    %c0_80 = arith.constant 0 : index
    %161 = vector.load %arg15[%c0_78, %c0_79, %c0_80] : memref<1x8x32xf32, #tpu.memory_space<vmem>>, vector<1x8x32xf32>
    %162 = vector.shape_cast %161 : vector<1x8x32xf32> to vector<8x32xf32>
    %163 = vector.shape_cast %160 : vector<8x32xf32> to vector<1x8x32xf32>
    tpu.vector_store %arg15[%c0_78, %c0_79, %c0_80], %163 {strides = array<i32>} : memref<1x8x32xf32, #tpu.memory_space<vmem>>, vector<1x8x32xf32>,
    return
  }
  func.func @transform_0(%arg0: i32, %arg1: i32) -> (i32, i32, i32) {
    %c0_i32 = arith.constant 0 : i32
    %c0_i32_0 = arith.constant 0 : i32
    %c0_i32_1 = arith.constant 0 : i32
    return %arg0, %c0_i32, %c0_i32_0 : i32, i32, i32
  }
  func.func @transform_1(%arg0: i32, %arg1: i32) -> (i32, i32) {
    %c0_i32 = arith.constant 0 : i32
    %c0_i32_0 = arith.constant 0 : i32
    %c0_i32_1 = arith.constant 0 : i32
    return %c0_i32, %c0_i32_0 : i32, i32
  }
  func.func @transform_2(%arg0: i32, %arg1: i32) -> (i32, i32) {
    %c0_i32 = arith.constant 0 : i32
    %c0_i32_0 = arith.constant 0 : i32
    %c0_i32_1 = arith.constant 0 : i32
    return %c0_i32, %c0_i32_0 : i32, i32
  }
  func.func @transform_3(%arg0: i32, %arg1: i32) -> (i32, i32) {
    %c0_i32 = arith.constant 0 : i32
    %c0_i32_0 = arith.constant 0 : i32
    %c0_i32_1 = arith.constant 0 : i32
    return %c0_i32, %c0_i32_0 : i32, i32
  }
  func.func @transform_4(%arg0: i32, %arg1: i32) -> (i32, i32) {
    %c0_i32 = arith.constant 0 : i32
    %c0_i32_0 = arith.constant 0 : i32
    %c0_i32_1 = arith.constant 0 : i32
    return %c0_i32, %c0_i32_0 : i32, i32
  }
  func.func @transform_5(%arg0: i32, %arg1: i32) -> (i32, i32) {
    %c0_i32 = arith.constant 0 : i32
    %c0_i32_0 = arith.constant 0 : i32
    %c0_i32_1 = arith.constant 0 : i32
    return %c0_i32, %c0_i32_0 : i32, i32
  }
  func.func @transform_6(%arg0: i32, %arg1: i32) -> (i32, i32) {
    %c0_i32 = arith.constant 0 : i32
    %c0_i32_0 = arith.constant 0 : i32
    %c0_i32_1 = arith.constant 0 : i32
    return %c0_i32, %c0_i32_0 : i32, i32
  }
  func.func @transform_7(%arg0: i32, %arg1: i32) -> (i32, i32) {
    %c0_i32 = arith.constant 0 : i32
    %c0_i32_0 = arith.constant 0 : i32
    %c0_i32_1 = arith.constant 0 : i32
    return %c0_i32, %c0_i32_0 : i32, i32
  }
  func.func @transform_8(%arg0: i32, %arg1: i32) -> (i32, i32) {
    %c0_i32 = arith.constant 0 : i32
    %c0_i32_0 = arith.constant 0 : i32
    %c0_i32_1 = arith.constant 0 : i32
    return %c0_i32, %c0_i32_0 : i32, i32
  }
  func.func @transform_9(%arg0: i32, %arg1: i32) -> (i32, i32) {
    %c0_i32 = arith.constant 0 : i32
    %c0_i32_0 = arith.constant 0 : i32
    %c0_i32_1 = arith.constant 0 : i32
    return %c0_i32, %c0_i32_0 : i32, i32
  }
  func.func @transform_10(%arg0: i32, %arg1: i32) -> (i32, i32) {
    %c0_i32 = arith.constant 0 : i32
    %c0_i32_0 = arith.constant 0 : i32
    %c0_i32_1 = arith.constant 0 : i32
    return %c0_i32, %c0_i32_0 : i32, i32
  }
  func.func @transform_11(%arg0: i32, %arg1: i32) -> (i32, i32) {
    %c0_i32 = arith.constant 0 : i32
    %c0_i32_0 = arith.constant 0 : i32
    %c0_i32_1 = arith.constant 0 : i32
    return %c0_i32, %c0_i32_0 : i32, i32
  }
  func.func @transform_12(%arg0: i32, %arg1: i32) -> (i32, i32) {
    %c0_i32 = arith.constant 0 : i32
    %c0_i32_0 = arith.constant 0 : i32
    %c0_i32_1 = arith.constant 0 : i32
    return %c0_i32, %c0_i32_0 : i32, i32
  }
  func.func @transform_13(%arg0: i32, %arg1: i32) -> (i32, i32, i32) {
    %c0_i32 = arith.constant 0 : i32
    %c0_i32_0 = arith.constant 0 : i32
    return %arg0, %arg1, %c0_i32 : i32, i32, i32
  }
  func.func @transform_14(%arg0: i32, %arg1: i32) -> (i32, i32, i32, i32) {
    %c0_i32 = arith.constant 0 : i32
    %c0_i32_0 = arith.constant 0 : i32
    %c0_i32_1 = arith.constant 0 : i32
    return %arg0, %c0_i32, %arg1, %c0_i32_0 : i32, i32, i32, i32
  }
}

</mosaic_0001>

<bundles_post_ra>
// kernel: tpu_custom_call.1
= control target key start
LH: loop header
LB: loop body
LE: loop exit
PB: predicated region body
PF: predicated region fallthrough
CT: control target
= control target key end

     0   :  { %s2003_s0 = inlined_call_operand.vmem [shape: f32[2,16,32], index: 0, kind: input, shape index: {}]   ;;  %s2004_s1 = inlined_call_operand.vmem [shape: bf16[32,96], index: 1, kind: input, shape index: {}]   ;;  %s2005_s2 = inlined_call_operand.vmem [shape: f32[1,96], index: 2, kind: input, shape index: {}]   ;;  %s2006_s3 = inlined_call_operand.vmem [shape: bf16[32,32], index: 3, kind: input, shape index: {}]   ;;  %s2007_s4 = inlined_call_operand.vmem [shape: f32[1,32], index: 4, kind: input, shape index: {}]   ;;  %s2008_s5 = inlined_call_operand.vmem [shape: f32[1,32], index: 5, kind: input, shape index: {}]   ;;  %s2009_s6 = inlined_call_operand.vmem [shape: f32[1,32], index: 6, kind: input, shape index: {}]   ;;  %s2010_s7 = inlined_call_operand.vmem [shape: bf16[32,128], index: 7, kind: input, shape index: {}]   ;;  %s2011_s8 = inlined_call_operand.vmem [shape: f32[1,128], index: 8, kind: input, shape index: {}]   ;;  %s2012_s9 = inlined_call_operand.vmem [shape: bf16[128,32], index: 9, kind: input, shape index: {}]   ;;  %s2013_s10 = inlined_call_operand.vmem [shape: f32[1,32], index: 10, kind: input, shape index: {}]   ;;  %s2014_s11 = inlined_call_operand.vmem [shape: f32[1,32], index: 11, kind: input, shape index: {}]   ;;  %s2015_s12 = inlined_call_operand.vmem [shape: f32[1,32], index: 12, kind: input, shape index: {}]   ;;  %s2016_s13 = inlined_call_operand.hbm [shape: f32[2,16,32], index: 13, kind: output, shape index: {0}]   ;;  %s2017_s14 = inlined_call_operand.hbm [shape: bf16[2,4,16,16], index: 14, kind: output, shape index: {1}]  }
   0x1   :  { %2027 = sst [smem:[#allocation20_spill]] %s2003_s0 }
   0x2   :  { %2028 = sst [smem:[#allocation21_spill]] %s2004_s1 }
   0x3   :  { %2029 = sst [smem:[#allocation22_spill]] %s2005_s2 }
   0x4   :  { %2030 = sst [smem:[#allocation23_spill]] %s2006_s3 }
   0x5   :  { %2031 = sst [smem:[#allocation24_spill]] %s2015_s12 }
   0x6   :  { %20 = vsyncpa [#allocation6], 0 }
   0x7   :  { %22 = vsyncpa [#allocation6 + $0x1], 0 }
   0x8   :  { %23 = vsyncpa [#allocation8], 0 }
   0x9   :  { %25 = vsyncpa [#allocation8 + $0x1], 0  ;;  %s1725_s29 = smov 0   ;;  %s1727_s30 = smov 0  }
   0xa   :  { %s1729_s15 = smov 0   ;;  %s1731_s16 = smov 0  }
   0xb   :  { %s1733_s17 = smov 0   ;;  %s1735_s18 = smov 0  }
   0xc   :  { %s1737_s19 = smov 0   ;;  %s1739_s20 = smov 0  }
   0xd LB: > { %2032 = sst [smem:[#allocation11_spill]] %s1608_s29  ;;  %s1261_s21 = sadd.s32 4294967295, %s1636_s20   ;;  %s1636_s20 = sphi %s1739_s20, %s31_s20   ;;  %s1632_s19 = sphi %s1737_s19, %s2056_s19   ;;  %s1628_s18 = sphi %s1735_s18, %s2055_s18   ;;  %s1624_s17 = sphi %s1733_s17, %s2054_s17   ;;  %s1620_s16 = sphi %s1731_s16, %s2053_s16   ;;  %s1616_s15 = sphi %s1729_s15, %s2052_s15   ;;  %s1612_s30 = sphi %s1727_s30, %s2058_s30   ;;  %s1608_s29 = sphi %s1725_s29, %s2057_s29  }
   0xe   : > { %2033 = sst [smem:[#allocation12_spill]] %s1616_s15  ;;  %s1262_s22 = sadd.s32 4294967294, %s1636_s20  }
   0xf   : > { %2034 = sst [smem:[#allocation13_spill]] %s1628_s18  ;;  %s40_s23 = sadd.s32 1, %s1628_s18 }
  0x10   : > { %2035 = sst [smem:[#allocation14_spill]] %s1632_s19  ;;  %p41_p0 = scmp.ge.s32.totalorder %s40_s23, 2 }
  0x11   : > { %2036 = sst [smem:[#allocation15_spill]] %s1636_s20  ;;  %s43_s24 = sadd.s32 1, %s1632_s19 }
  0x12   : > { %p340_p1 = scmp.ne.s32.totalorder %s1616_s15, %s1612_s30  ;;  %p341_p2 = scmp.eq.s32.totalorder %s1261_s21, 3 }
  0x13   : > { %s2060_s23 = smov (%p41_p0, %s40_s23), 0  ;;  %s2062_s24 = smov (!%p41_p0, %s43_s24), %s1632_s19 }
  0x14   : > { %2037 = sst [smem:[#allocation16_spill]] %s2060_s23  ;;  %s326_s25 = ssub.s32 %s1628_s18, %s2060_s23 }
  0x15   : > { %p1776_p3 = por %p341_p2, %p340_p1  ;;  %p45_p4 = scmp.ge.s32.totalorder %s2062_s24, 2 }
  0x16   : > { %p346_p5 = scmp.ne.s32.totalorder %s1612_s30, %s1608_s29  ;;  %p347_p6 = scmp.eq.s32.totalorder %s1262_s22, 3 }
  0x17   : > { %p1265_p7 = scmp.ge.s32.totalorder %s1636_s20, 1  ;;  %s2064_s24 = smov (%p45_p4, %s2062_s24), 0 }
  0x18   : > { %2039 = sst [smem:[#allocation17_spill]] %s2064_s24  ;;  %p1785_p8 = por %p347_p6, %p346_p5 }
  0x19   : > { %p437_p9 = scmp.lt.s32.totalorder %s1636_s20, 5  ;;  %s325_s28 = ssub.s32 %s1632_s19, %s2064_s24 }
  0x1a   : > { %s2040_s27 = scalar_select %p1785_p8, 1, 0 }
  0x1b   : > { %s330_s21 = sadd.s32 1, %s1616_s15  ;;  %s327_s12 = sor.u32 %s326_s25, %s325_s28 }
  0x1c   : > { %2041 = sst [smem:[#allocation18_spill]] %s2040_s27  ;;  %p438_p10 = pnand %p1265_p7, %p437_p9 }
  0x1d   : > { %p328_p11 = scmp.eq.s32.totalorder %s327_s12, 0  ;;  %s1797_s22 = sand.u32 (!%p438_p10), 1, %s1612_s30  }
  0x1e   : > { %441 = sbr.rel (%p438_p10) target bundleno = 2259 (0x8d3), region = 72  ;;  %p488_p12 = scmp.lt.s32.totalorder (!%p438_p10), %s1624_s17, 1 }
  0x1f   : > { %s1794_s23 = scalar_select %p328_p11, %s1616_s15, %s330_s21  }
  0x20   : > { %s1266_s18 = sshll.u32 (!%p438_p10), %s1797_s22, 3  ;;  %s1267_s29 = sshll.u32 (!%p438_p10), %s1797_s22, 4 }
  0x21   : > { %2042 = sst [smem:[#allocation19_spill]] %s1794_s23  ;;  %s1808_s12 = scalar_lea.vmem (!%p438_p10), [#allocation5], %s1266_s18 }
  0x22   : > { %s2043_s0 = sld [smem:[#allocation20_spill]] (!%p438_p10)  ;;  %s1810_s28 = scalar_lea.vmem (!%p438_p10), [#allocation7], %s1267_s29 }
  0x23   : > { %s489_s27 = scalar_select %p488_p12, %s1624_s17, 1 }
  0x24   : > { %p1270_p13 = scmp.ne.s32.totalorder %s1620_s16, 0 }
  0x25   : > { %s1367_s20 = sshll.u32 %s489_s27, 4  ;;  %s2044_s1 = sld [smem:[#allocation21_spill]] (!%p1270_p13) }
  0x26   : > { %497 = sbr.rel (%p1270_p13) target bundleno = 498 (0x1f2), region = 76  ;;  %s2045_s2 = sld [smem:[#allocation22_spill]] (!%p1270_p13) }
  0x27   : > { %s1638_s19 = smov (!%p1270_p13), 64   ;;  %s1639_s15 = smov (!%p1270_p13), 96  }
  0x28   : > { %s1806_s25 = scalar_lea.vmem %s2043_s0, %s1367_s20 }
  0x2b   : > { %v1369_v0 = vld [vmem:[%s2044_s1 + $0x8] sm:$0xff]  ;;  %v1368_v1 = vld [vmem:[%s2044_s1] sm:$0xff]  ;;  %vm521_vm0 = vcmask 261120   ;;  %vm541_vm1 = vcmask 257024   ;;  %vm588_vm2 = vcmask 125952  }
  0x2c   : > { %531 = vmatpush.bf16.msra.mxu0 %v1369_v0  ;;  %v498_v2 = vld [vmem:[%s1806_s25] sm:$0xff]  ;;  %v499_v3 = vld [vmem:[%s1806_s25 + $0x8] sm:$0xff] }
  0x2d   : > { %v500_v4 = vpack.c.bf16 %v499_v3, %v498_v2  ;;  %v1480_v5 = vld [vmem:[%s2045_s2] ss:$0 sm:$0xff] }
  0x30   : > { %532 = vmatpush.bf16.msra.mxu0 %v1368_v1 }
  0x33   : > { %1279 = vmatmul.msk.bf16.vlgmr.msra.gmra.mxu0 %vm521_vm0, %v500_v4 }
  0xb0   : > { %v534_v6 = vpop.f32.mrf.mxu0 }
  0xb1   : > { %v535_v7 = vadd.f32 %v1480_v5, %v534_v6 }
  0xb3   : > { %v539_v8 = vpack.c.bf16 %v535_v7, %v535_v7 }
  0xb5   : > { %595 = vrot.lane.b32.xlu1 %v539_v8, %s1638_s19  ;;  %542 = vst.msk [vmem:[#allocation2] sm:$0xf] %vm541_vm1, %v539_v8 }
  0xb8   : > { %v536_v9 = vpop.f32.mrf.mxu0 }
  0xb9   : > { %v537_v10 = vadd.f32 %v1480_v5, %v536_v9 }
  0xbb   : > { %v540_v11 = vpack.c.bf16 %v537_v10, %v537_v10  ;;  %v1475_v12 = vpack.i.bf16 %v537_v10, %v535_v7 }
  0xbd   : > { %543 = vst.msk [vmem:[#allocation2 + $0x4] sm:$0xf] %vm541_vm1, %v540_v11  ;;  %1476 = vrot.lane.b32.xlu0 %v1475_v12, %s1639_s15  ;;  %597 = vrot.lane.b32.xlu1 %v540_v11, %s1638_s19 }
 0x127   : > { %v596_v13 = vpop.permute.xlu1 %595 }
 0x128   : > { %601 = vst.msk [vmem:[#allocation4] sm:$0xf] %vm541_vm1, %v596_v13 }
 0x12f   : > { %v1477_v14 = vpop.permute.xlu0 %1476  ;;  %v598_v15 = vpop.permute.xlu1 %597 }
 0x130   : > { %602 = vst.msk [vmem:[#allocation4 + $0x4] sm:$0xf] %vm541_vm1, %v598_v15  ;;  %v1478_v16 = vunpack.i.l.bf16 %v1477_v14  ;;  %v1479_v17 = vunpack.i.h.bf16 %v1477_v14 }
 0x132   : > { %552 = vxpose.xlu0.b32.start [1/2] (short) (narrow) %v1478_v16, 32 }
 0x13a   : > { %553 = vxpose.xlu0.b32.end [2/2] (short) (narrow) %v1479_v17, 32 }
 0x1d6   : > { %v568_v18 = vpop.trf.xlu0 }
 0x1d7   : > { %v584_v19 = vpack.c.bf16 %v568_v18, %v568_v18 }
 0x1d9   : > { %589 = vst.msk [vmem:[#allocation3] sm:$0xf] %vm588_vm2, %v584_v19 }
 0x1de   : > { %v569_v20 = vpop.trf.xlu0 }
 0x1df   : > { %v585_v21 = vpack.c.bf16 %v569_v20, %v569_v20 }
 0x1e1   : > { %590 = vst.msk [vmem:[#allocation3 + $0x4] sm:$0xf] %vm588_vm2, %v585_v21 }
 0x1e6   : > { %v570_v22 = vpop.trf.xlu0 }
 0x1e7   : > { %v586_v23 = vpack.c.bf16 %v570_v22, %v570_v22 }
 0x1e9   : > { %591 = vst.msk [vmem:[#allocation3 + $0x8] sm:$0xf] %vm588_vm2, %v586_v23 }
 0x1ee   : > { %v571_v24 = vpop.trf.xlu0 }
 0x1ef   : > { %v587_v25 = vpack.c.bf16 %v571_v24, %v571_v24 }
 0x1f1   : > { %592 = vst.msk [vmem:[#allocation3 + $0xc] sm:$0xf] %vm588_vm2, %v587_v25 }
 0x1f2 PF: > { %v611_v26 = vld [vmem:[#allocation3] sm:$0xf]  ;;  %vm618_vm3 = vcmask 1043456   ;;  %s1280_s20 = sshll.u32 %s1620_s16, 3  ;;  %v672_v28 = vld [vmem:[#allocation3 + $0x4] sm:$0xf] }
 0x1f3   : > { %v620_v27 = vsel %vm618_vm3, %v611_v26, 0  ;;  %s606_s23 = sshra.s32 %s1280_s20, 3  ;;  %vm614_vm4 = vcmask 64512   ;;  %v684_v29 = vsel %vm618_vm3, %v672_v28, 0  ;;  %v737_v30 = vld [vmem:[#allocation3 + $0x8] sm:$0xf] }
 0x1f4   : > { %629 = vmatpush.bf16.msra.mxu0 %v620_v27  ;;  %s1281_s24 = sshll.u32 %s606_s23, 2  ;;  %693 = vmatpush.bf16.msra.mxu3 %v684_v29  ;;  %v746_v31 = vsel %vm618_vm3, %v737_v30, 0  ;;  %s1640_s27 = smov 112   ;;  %vm635_vm5 = vcmask 130048   ;;  %v1370_v57 = vld [vmem:[#allocation4] sm:$0xff]  ;;  %vm648_vm6 = vcmask 125952  }
 0x1f5   : > { %s609_s21 = scalar_lea.vmem [#allocation2], %s1281_s24  ;;  %s1641_s29 = smov 120   ;;  %666 = vmatpush.bf16.msra.mxu1 %v1370_v57  ;;  %v1373_v61 = vld [vmem:[#allocation4] sm:$0xff]  ;;  %vm875_vm7 = vcmask 195584   ;;  %vm898_vm8 = vcmask 261120  }
 0x1f6   : > { %v610_v32 = vld [vmem:[%s609_s21] sm:$0xf]  ;;  %s1642_s18 = smov 104   ;;  %v1371_v9 = vld [vmem:[#allocation4] sm:$0xff]  ;;  %s1643_s19 = smov 8  }
 0x1f7   : > { %1282 = vmatmul.msk.bf16.vlgmr.msra.gmra.mxu0 %vm614_vm4, %v610_v32  ;;  %v676_v33 = vunpack.c.l.b16 %v610_v32  ;;  %v1372_v10 = vld [vmem:[#allocation4] sm:$0xff]  ;;  %s1644_s15 = smov 24   ;;  %s1645_s23 = smov 16  }
 0x1f8   : > { %755 = vmatpush.bf16.msrb.mxu0 %v746_v31  ;;  %v799_v35 = vld [vmem:[#allocation3 + $0xc] sm:$0xf]  ;;  %s2046_s3 = sld [smem:[#allocation23_spill]]  ;;  %s1144_s21 = sshll.u32 %s1810_s28, 4  ;;  %s1145_s21 = int_to_ptr.vmem [resolvable:$true] %s1144_s21 }
 0x1f9   : > { %v677_v34 = vpack.c.b16 %v676_v33, %v676_v33  ;;  %v808_v36 = vsel %vm618_vm3, %v799_v35, 0 }
 0x1fa   : > { %817 = vmatpush.bf16.msra.mxu2 %v808_v36 }
 0x1fb   : > { %740 = vrot.lane.b32.xlu1 %v677_v34, %s1640_s27  ;;  %678 = vrot.lane.b32.xlu0 %v677_v34, %s1641_s29 }
 0x203   : > { %802 = vrot.lane.b32.xlu0 %v677_v34, %s1642_s18 }
 0x26d   : > { %v741_v37 = vpop.permute.xlu1 %740  ;;  %v679_v38 = vpop.permute.xlu0 %678 }
 0x26e   : > { %1288 = vmatmul.msk.bf16.vlgmr.msra.gmra.mxu3 %vm614_vm4, %v679_v38  ;;  %1295 = vmatmul.msk.bf16.vlgmr.msrb.gmra.mxu0 %vm614_vm4, %v741_v37 }
 0x274   : > { %v631_v39 = vpop.f32.mrf.mxu0 }
 0x275   : > { %v803_v40 = vpop.permute.xlu0 %802  ;;  %v636_v41 = vsel %vm635_vm5, %v631_v39, -inf }
 0x276   : > { %1302 = vmatmul.msk.bf16.vlgmr.msra.gmra.mxu2 %vm614_vm4, %v803_v40  ;;  %637 = vmax.xlane.f32.xlu2 %v636_v41  ;;  %v1374_v40 = vld [vmem:[%s2046_s3] sm:$0xff] }
 0x27c   : > { %v633_v42 = vpop.f32.mrf.mxu0 }
 0x2e9   : > { %v638_v45 = vpop.xlane.xlu2 %637 }
 0x2ea   : > { %v639_v46 = vsub.f32 %v631_v39, %v638_v45  ;;  %v1375_v39 = vld [vmem:[%s2046_s3 + $0x8] sm:$0xff] }
 0x2eb   : > { %v757_v43 = vpop.f32.mrf.mxu0  ;;  %908 = vmatpush.bf16.msra.mxu0 %v1375_v39 }
 0x2ec   : > { %v761_v44 = vsel %vm635_vm5, %v757_v43, -inf  ;;  %v640_v50 = vmul.f32 1.442695, %v639_v46 }
 0x2ed   : > { %762 = vmax.xlane.f32.xlu0 %v761_v44 }
 0x2ee   : > { %1488 = vpow2.f32 %v640_v50 }
 0x2ef   : > { %909 = vmatpush.bf16.msra.mxu0 %v1374_v40 }
 0x2f1   : > { %v695_v47 = vpop.f32.mrf.mxu3 }
 0x2f2   : > { %v699_v48 = vsel %vm635_vm5, %v695_v47, -inf }
 0x2f3   : > { %700 = vmax.xlane.f32.xlu1 %v699_v48  ;;  %v759_v49 = vpop.f32.mrf.mxu0  ;;  %v1481_v48 = vld [vmem:[%s2007_s4] ss:$0 sm:$0xff] }
 0x2f4   : > { %v1489_v54 = vpop.eup %1488 }
 0x2f5   : > { %v642_v56 = vsel %vm635_vm5, %v1489_v54, 0.0 }
 0x2f9   : > { %v697_v51 = vpop.f32.mrf.mxu3  ;;  %v819_v52 = vpop.f32.mrf.mxu2 }
 0x2fa   : > { %v823_v53 = vsel %vm635_vm5, %v819_v52, -inf }
 0x2fb   : > { %824 = vmax.xlane.f32.xlu2 %v823_v53 }
 0x301   : > { %v821_v55 = vpop.f32.mrf.mxu2  ;;  %842 = vrot.lane.b32.xlu0 %v1373_v61, %s1642_s18 }
 0x302   : > { %v1646_v55 = vmov 32.0  }
 0x303   : > { %643 = vadd.xlane.f32.xlu2 %v642_v56 }
 0x360   : > { %v763_v11 = vpop.xlane.xlu0 %762 }
 0x361   : > { %v764_v12 = vsub.f32 %v757_v43, %v763_v11  ;;  %v1382_v11 = vld [vmem:[%s2012_s9 + $0x20] sm:$0xff] }
 0x363   : > { %v765_v13 = vmul.f32 1.442695, %v764_v12 }
 0x366   : > { %v701_v58 = vpop.xlane.xlu1 %700 }
 0x367   : > { %v702_v59 = vsub.f32 %v695_v47, %v701_v58 }
 0x369   : > { %v703_v60 = vmul.f32 1.442695, %v702_v59 }
 0x36b   : > { %1490 = vpow2.f32 %v703_v60 }
 0x36e   : > { %v825_v62 = vpop.xlane.xlu2 %824 }
 0x36f   : > { %v826_v63 = vsub.f32 %v819_v52, %v825_v62 }
 0x371   : > { %v1491_v0 = vpop.eup %1490  ;;  %v827_v1 = vmul.f32 1.442695, %v826_v63 }
 0x372   : > { %v705_v2 = vsel %vm635_vm5, %v1491_v0, 0.0 }
 0x373   : > { %1492 = vpow2.f32 %v827_v1  ;;  %706 = vadd.xlane.f32.xlu2 %v705_v2  ;;  %v843_v18 = vpop.permute.xlu0 %842 }
 0x376   : > { %v644_v3 = vpop.xlane.xlu2 %643 }
 0x377   : > { %1494 = vrcp.f32 %v644_v3  ;;  %v1377_v3 = vld [vmem:[%s2010_s7 + $0x8] sm:$0xff] }
 0x378   : > { %1496 = vpow2.f32 %v765_v13 }
 0x379   : > { %v1493_v4 = vpop.eup %1492 }
 0x37a   : > { %v829_v5 = vsel %vm635_vm5, %v1493_v4, 0.0 }
 0x37b   : > { %830 = vadd.xlane.f32.xlu1 %v829_v5  ;;  %v1385_v5 = vld [vmem:[%s2012_s9 + $0x38] sm:$0xff] }
 0x37c   : > { %1062 = vmatpush.bf16.msrb.mxu2 %v1385_v5 }
 0x37d   : > { %v1495_v6 = vpop.eup %1494 }
 0x37e   : > { %v646_v7 = vmul.f32 %v1495_v6, %v1489_v54  ;;  %v1497_v14 = vpop.eup %1496 }
 0x37f   : > { %v767_v15 = vsel %vm635_vm5, %v1497_v14, 0.0 }
 0x380   : > { %v647_v8 = vpack.c.bf16 %v646_v7, %v646_v7 }
 0x382   : > { %649 = vst.msk [vmem:[%s1810_s28] sm:$0xf] %vm648_vm6, %v647_v8  ;;  %1287 = vmatmul.msk.bf16.vlgmr.msra.gmra.mxu1 %vm635_vm5, %v647_v8  ;;  %v1384_v8 = vld [vmem:[%s2012_s9 + $0x30] sm:$0xff] }
 0x383   : > { %1063 = vmatpush.bf16.msrb.mxu2 %v1384_v8 }
 0x38b   : > { %718 = vrot.lane.b32.xlu2 %v1371_v9, %s1641_s29  ;;  %s1115_s29 = scalar_lea.sflag [#allocation8], %s1797_s22 }
 0x394   : > { %780 = vrot.lane.b32.xlu1 %v1372_v10, %s1640_s27  ;;  %v1383_v10 = vld [vmem:[%s2012_s9 + $0x28] sm:$0xff] }
 0x395   : > { %1064 = vmatpush.bf16.msrb.mxu2 %v1383_v10 }
 0x399   : > { %1065 = vmatpush.bf16.msrb.mxu2 %v1382_v11 }
 0x3b4   : > { %768 = vadd.xlane.f32.xlu2 %v767_v15 }
 0x3e6   : > { %v707_v16 = vpop.xlane.xlu2 %706 }
 0x3e7   : > { %1498 = vrcp.f32 %v707_v16 }
 0x3ed   : > { %v1499_v17 = vpop.eup %1498 }
 0x3ee   : > { %v709_v19 = vmul.f32 %v1499_v17, %v1491_v0  ;;  %v831_v20 = vpop.xlane.xlu1 %830  ;;  %v719_v21 = vpop.permute.xlu2 %718  ;;  %v1380_v17 = vld [vmem:[%s2012_s9 + $0x10] sm:$0xff] }
 0x3ef   : > { %1500 = vrcp.f32 %v831_v20  ;;  %731 = vmatpush.bf16.msrb.mxu3 %v719_v21  ;;  %v1482_v20 = vld [vmem:[%s2008_s5] ss:$0 sm:$0xff] }
 0x3f0   : > { %v710_v22 = vpack.c.bf16 %v709_v19, %v709_v19 }
 0x3f2   : > { %1289 = vst.msk [vmem:[%s1810_s28 + $0x4] sm:$0xf] %vm648_vm6, %v710_v22  ;;  %1294 = vmatmul.msk.bf16.vlgmr.msrb.gmra.mxu3 %vm635_vm5, %v710_v22  ;;  %v1483_v22 = vld [vmem:[%s2009_s6] ss:$0 sm:$0xff] }
 0x3f3   : > { %855 = vmatpush.bf16.msra.mxu3 %v843_v18 }
 0x3f5   : > { %v1501_v23 = vpop.eup %1500 }
 0x3f6   : > { %v833_v24 = vmul.f32 %v1501_v23, %v1493_v4  ;;  %v1376_v4 = vld [vmem:[%s2010_s7] sm:$0xff] }
 0x3f8   : > { %v834_v25 = vpack.c.bf16 %v833_v24, %v833_v24 }
 0x3fa   : > { %1303 = vst.msk [vmem:[%s1810_s28 + $0xc] sm:$0xf] %vm648_vm6, %v834_v25 }
 0x3ff   : > { %v668_v26 = vpop.f32.mrf.mxu1 }
 0x402   : > { %1308 = vmatmul.msk.bf16.vlgmr.msra.gmra.mxu3 %vm635_vm5, %v834_v25 }
 0x406   : > { %v781_v27 = vpop.permute.xlu1 %780 }
 0x407   : > { %v670_v28 = vpop.f32.mrf.mxu1  ;;  %793 = vmatpush.bf16.msrb.mxu1 %v781_v27  ;;  %v1379_v27 = vld [vmem:[%s2012_s9 + $0x8] sm:$0xff] }
 0x408   : > { %v1378_v28 = vld [vmem:[%s2012_s9] sm:$0xff] }
 0x40b   : > { %985 = vmatpush.bf16.msra.mxu1 %v1377_v3 }
 0x40f   : > { %986 = vmatpush.bf16.msra.mxu1 %v1376_v4 }
 0x427   : > { %v769_v29 = vpop.xlane.xlu2 %768 }
 0x428   : > { %1502 = vrcp.f32 %v769_v29  ;;  %v1484_v29 = vld [vmem:[%s2011_s8] ss:$0 sm:$0xff] }
 0x429   : > { %1504 = vrcp.f32 %v1646_v55 }
 0x42e   : > { %v1503_v30 = vpop.eup %1502 }
 0x42f   : > { %v771_v31 = vmul.f32 %v1503_v30, %v1497_v14  ;;  %v1505_v56 = vpop.eup %1504  ;;  %v1381_v14 = vld [vmem:[%s2012_s9 + $0x18] sm:$0xff] }
 0x430   : > { %v920_v57 = vmul.f32 32.0, %v1505_v56  ;;  %vm924_vm9 = vweird.f32 %v1505_v56  ;;  %1066 = vmatpush.bf16.msrb.mxu2 %v1381_v14 }
 0x431   : > { %v772_v32 = vpack.c.bf16 %v771_v31, %v771_v31 }
 0x432   : > { %v921_v58 = vsub.f32 1.0, %v920_v57 }
 0x433   : > { %1296 = vst.msk [vmem:[%s1810_s28 + $0x8] sm:$0xf] %vm648_vm6, %v772_v32  ;;  %1301 = vmatmul.msk.bf16.vlgmr.msrb.gmra.mxu1 %vm635_vm5, %v772_v32 }
 0x434   : > { %v922_v59 = vmul.f32 %v1505_v56, %v921_v58  ;;  %1067 = vmatpush.bf16.msrb.mxu2 %v1380_v17 }
 0x436   : > { %v923_v60 = vadd.f32 %v1505_v56, %v922_v59 }
 0x438   : > { %v1881_v61 = vsel %vm924_vm9, %v1505_v56, %v923_v60  ;;  %1068 = vmatpush.bf16.msrb.mxu2 %v1379_v27 }
 0x43c   : > { %1069 = vmatpush.bf16.msrb.mxu2 %v1378_v28 }
 0x475   : > { %v733_v33 = vpop.f32.mrf.mxu3 }
 0x476   : > { %862 = vrot.lane.b32.xlu0 %v733_v33, %s1643_s19  ;;  %s1363_s19 = sshll.u32 %s1624_s17, 3 }
 0x47d   : > { %v735_v34 = vpop.f32.mrf.mxu3 }
 0x485   : > { %v857_v35 = vpop.f32.mrf.mxu3 }
 0x486   : > { %870 = vrot.lane.b32.xlu0 %v857_v35, %s1644_s15  ;;  %s604_s15 = scalar_lea.vmem %s1806_s25, %s1280_s20  ;;  %v1485_v35 = vld [vmem:[%s2013_s10] ss:$0 sm:$0xff] }
 0x487   : > { %v605_v50 = vld [vmem:[%s604_s15] sm:$0xff]  ;;  %s1141_s15 = sadd.s32 %s1620_s16, %s1363_s19  ;;  %s1530_s19 = scalar_lea.hbm %s2017_s14, 64 }
 0x488   : > { %s1364_s25 = sshll.u32 %s1141_s15, 2 }
 0x489   : > { %s1143_s24 = scalar_lea.hbm %s2017_s14, %s1364_s25 }
 0x48a   : > { %s1146_s27 = sshll.u32 %s1143_s24, 4  ;;  %s1147_s27 = int_to_ptr.hbm [resolvable:$true] %s1146_s27 }
 0x48b   : > { %s1524_s18 = sshra.s32 %s1147_s27, 4  ;;  %s1525_s18 = int_to_ptr.hbm [resolvable:$true] %s1524_s18 }
 0x48c   : > { %s1526_s0 = scalar_lea.hbm %s1525_s18, 16  ;;  %p1531_p4 = scmp.lt.s32.totalorder %s1525_s18, %s2017_s14 }
 0x48d   : > { %v859_v36 = vpop.f32.mrf.mxu3  ;;  %p1527_p0 = scmp.ne.s32.totalorder %s1525_s18, %s1526_s0  ;;  %p1532_p5 = scmp.lt.s32.totalorder %s1530_s19, %s1526_s0 }
 0x48f   : > { %p1528_p1 = pnand %p1527_p0, %p1776_p3  ;;  %p1533_p6 = por %p1532_p5, %p1531_p4 }
 0x491   : > { %p1529_p2 = pneg %p1528_p1 }
 0x493   : > { %p1534_p7 = pnand %p1533_p6, %p1529_p2 }
 0x4b0   : > { %v795_v37 = vpop.f32.mrf.mxu1 }
 0x4b1   : > { %866 = vrot.lane.b32.xlu1 %v795_v37, %s1645_s23 }
 0x4b8   : > { %v797_v38 = vpop.f32.mrf.mxu1 }
 0x4e8   : > { %v863_v41 = vpop.permute.xlu0 %862 }
 0x4e9   : > { %v873_v42 = vsel %vm614_vm4, %v668_v26, %v863_v41 }
 0x4f8   : > { %v871_v44 = vpop.permute.xlu0 %870 }
 0x523   : > { %v867_v43 = vpop.permute.xlu1 %866 }
 0x524   : > { %v874_v45 = vsel %vm635_vm5, %v873_v42, %v867_v43 }
 0x525   : > { %v876_v46 = vsel %vm875_vm7, %v874_v45, %v871_v44 }
 0x526   : > { %v877_v47 = vpack.c.bf16 %v876_v46, %v876_v46 }
 0x528   : > { %1317 = vmatmul.msk.bf16.vlgmr.msra.gmra.mxu0 %vm898_vm8, %v877_v47 }
 0x5a5   : > { %v911_v49 = vpop.f32.mrf.mxu0 }
 0x5a6   : > { %v912_v51 = vadd.f32 %v1481_v48, %v911_v49 }
 0x5a8   : > { %v915_v52 = vadd.f32 %v912_v51, %v605_v50 }
 0x5aa   : > { %v916_v53 = vsel %vm898_vm8, %v915_v52, 0.0 }
 0x5ab   : > { %917 = vadd.xlane.f32.xlu1 %v916_v53 }
 0x5ad   : > { %v913_v54 = vpop.f32.mrf.mxu0 }
 0x61e   : > { %v918_v62 = vpop.xlane.xlu1 %917 }
 0x61f   : > { %v926_v63 = vmul.f32 %v1881_v61, %v918_v62 }
 0x621   : > { %v927_v0 = vsub.f32 %v915_v52, %v926_v63 }
 0x623   : > { %v928_v1 = vmul.f32 %v927_v0, %v927_v0 }
 0x625   : > { %v929_v2 = vsel %vm898_vm8, %v928_v1, 0.0 }
 0x626   : > { %930 = vadd.xlane.f32.xlu0 %v929_v2 }
 0x699   : > { %v931_v6 = vpop.xlane.xlu0 %930 }
 0x69a   : > { %v932_v7 = vmul.f32 %v931_v6, %v1881_v61 }
 0x69c   : > { %v933_v9 = vadd.f32 1e-05, %v932_v7 }
 0x69e   : > { %1506 = vrsqrt.f32 %v933_v9  ;;  %vm940_vm11 = vweird.f32 %v933_v9 }
 0x6a4   : > { %v1507_v12 = vpop.eup %1506 }
 0x6a5   : > { %v935_v13 = vmul.f32 %v1507_v12, %v933_v9  ;;  %vm941_vm10 = vweird.f32 %v1507_v12 }
 0x6a6   : > { %vm942_vm12 = vmor %vm940_vm11, %vm941_vm10 }
 0x6a7   : > { %v936_v15 = vmul.f32 %v1507_v12, %v935_v13 }
 0x6a9   : > { %v937_v16 = vmul.f32 0.5, %v936_v15 }
 0x6ab   : > { %v938_v18 = vsub.f32 1.5, %v937_v16 }
 0x6ad   : > { %v939_v19 = vmul.f32 %v1507_v12, %v938_v18 }
 0x6af   : > { %v943_v21 = vsel %vm942_vm12, %v1507_v12, %v939_v19 }
 0x6b0   : > { %v944_v23 = vmul.f32 %v943_v21, %v927_v0 }
 0x6b2   : > { %v949_v24 = vmul.f32 %v1482_v20, %v944_v23 }
 0x6b4   : > { %v954_v25 = vadd.f32 %v1483_v22, %v949_v24 }
 0x6b6   : > { %v955_v26 = vpack.c.bf16 %v954_v25, %v954_v25 }
 0x6b8   : > { %1326 = vmatmul.msk.bf16.vlgmr.msra.gmra.mxu1 %vm898_vm8, %v955_v26 }
 0x735   : > { %v988_v30 = vpop.f32.mrf.mxu1 }
 0x736   : > { %v989_v31 = vadd.f32 %v1484_v29, %v988_v30 }
 0x738   : > { %v992_v32 = vmax.f32 %v989_v31, 0.0 }
 0x73a   : > { %v993_v33 = vpack.c.bf16 %v992_v32, %v992_v32 }
 0x73c   : > { %1070 = vmatmul.bf16.vlgmr.msrb.gmra.mxu2 %v993_v33 }
 0x73d   : > { %v990_v34 = vpop.f32.mrf.mxu1 }
 0x7bf   : > { %v1071_v36 = vpop.f32.mrf.mxu2 }
 0x7c0   : > { %v1072_v37 = vadd.f32 %v1485_v35, %v1071_v36 }
 0x7c2   : > { %v1075_v38 = vadd.f32 %v1072_v37, %v954_v25 }
 0x7c4   : > { %v1076_v39 = vsel %vm898_vm8, %v1075_v38, 0.0 }
 0x7c5   : > { %1077 = vadd.xlane.f32.xlu2 %v1076_v39 }
 0x7c7   : > { %v1073_v40 = vpop.f32.mrf.mxu2 }
 0x838   : > { %v1078_v41 = vpop.xlane.xlu2 %1077 }
 0x839   : > { %v1079_v42 = vmul.f32 %v1078_v41, %v1881_v61 }
 0x83b   : > { %v1080_v43 = vsub.f32 %v1075_v38, %v1079_v42 }
 0x83d   : > { %v1081_v44 = vmul.f32 %v1080_v43, %v1080_v43 }
 0x83f   : > { %v1082_v45 = vsel %vm898_vm8, %v1081_v44, 0.0 }
 0x840   : > { %1083 = vadd.xlane.f32.xlu2 %v1082_v45 }
 0x841   : > { %1537 = shalt.err (!%p1534_p7)
}
 0x842   : > { %s1647_s28 = smov 64   ;;  %s1648_s25 = smov 128   ;;  %v1486_v55 = vld [vmem:[%s2014_s11] ss:$0 sm:$0xff] }
 0x843   : > { %s1649_s20 = smov 4   ;;  %s1361_s0 = sshll.u32 %s1624_s17, 1 }
 0x844   : > { %1387 = dma.vmem_to_hbm [thread:$0]  (%p1776_p3), %s1145_s21, 256, %s1147_s27, %s1115_s29, %s1647_s28, %s1648_s25, %s1649_s20  }
 0x845   : > { %s1125_s1 = sadd.s32 %s1620_s16, %s1361_s0  ;;  %s2047_s29 = sld [smem:[#allocation24_spill]] }
 0x846   : > { %s1362_s2 = sshll.u32 %s1125_s1, 3  ;;  %s1129_s18 = sshll.u32 %s1808_s12, 4  ;;  %s1130_s18 = int_to_ptr.vmem [resolvable:$true] %s1129_s18 }
 0x847   : > { %s1127_s27 = scalar_lea.hbm %s2016_s13, %s1362_s2  ;;  %s1110_s15 = scalar_lea.sflag [#allocation6], %s1797_s22 }
 0x848   : > { %s1131_s19 = sshll.u32 %s1127_s27, 4  ;;  %s1558_s1 = scalar_lea.hbm %s2016_s13, 32  ;;  %s1132_s19 = int_to_ptr.hbm [resolvable:$true] %s1131_s19 }
 0x849   : > { %s1552_s28 = sshra.s32 %s1132_s19, 4  ;;  %s1553_s28 = int_to_ptr.hbm [resolvable:$true] %s1552_s28 }
 0x84a   : > { %s1554_s25 = scalar_lea.hbm %s1553_s28, 8  ;;  %p1559_p12 = scmp.lt.s32.totalorder %s1553_s28, %s2016_s13 }
 0x84b   : > { %v1487_v58 = vld [vmem:[%s2047_s29] ss:$0 sm:$0xff]  ;;  %p1555_p9 = scmp.ne.s32.totalorder %s1553_s28, %s1554_s25  ;;  %p1560_p13 = scmp.lt.s32.totalorder %s1558_s1, %s1554_s25 }
 0x84d   : > { %p1556_p10 = pnand %p1555_p9, %p1776_p3  ;;  %p1561_p0 = por %p1560_p13, %p1559_p12 }
 0x84f   : > { %p1557_p11 = pneg %p1556_p10 }
 0x851   : > { %p1562_p1 = pnand %p1561_p0, %p1557_p11 }
 0x8b3   : > { %v1084_v46 = vpop.xlane.xlu2 %1083 }
 0x8b4   : > { %v1085_v47 = vmul.f32 %v1084_v46, %v1881_v61 }
 0x8b6   : > { %v1086_v48 = vadd.f32 1e-05, %v1085_v47 }
 0x8b8   : > { %1508 = vrsqrt.f32 %v1086_v48  ;;  %vm1093_vm14 = vweird.f32 %v1086_v48 }
 0x8be   : > { %v1509_v49 = vpop.eup %1508 }
 0x8bf   : > { %v1088_v50 = vmul.f32 %v1509_v49, %v1086_v48  ;;  %vm1094_vm13 = vweird.f32 %v1509_v49 }
 0x8c0   : > { %vm1095_vm15 = vmor %vm1093_vm14, %vm1094_vm13 }
 0x8c1   : > { %v1089_v51 = vmul.f32 %v1509_v49, %v1088_v50 }
 0x8c3   : > { %v1090_v52 = vmul.f32 0.5, %v1089_v51 }
 0x8c5   : > { %v1091_v53 = vsub.f32 1.5, %v1090_v52 }
 0x8c7   : > { %v1092_v54 = vmul.f32 %v1509_v49, %v1091_v53 }
 0x8c9   : > { %v1096_v56 = vsel %vm1095_vm15, %v1509_v49, %v1092_v54 }
 0x8ca   : > { %v1097_v57 = vmul.f32 %v1096_v56, %v1080_v43 }
 0x8cc   : > { %v1102_v59 = vmul.f32 %v1486_v55, %v1097_v57 }
 0x8ce   : > { %v1107_v60 = vadd.f32 %v1487_v58, %v1102_v59 }
 0x8d0   : > { %1108 = vst.msk [vmem:[%s1808_s12] sm:$0xff] %vm898_vm8, %v1107_v60 }
 0x8d1   : > { %1565 = shalt.err (!%p1562_p1)
}
 0x8d2   : > { %1386 = dma.vmem_to_hbm [thread:$0]  (%p1776_p3), %s1130_s18, 128, %s1132_s19, %s1110_s15  }
 0x8d3 PF: > { %s2048_s22 = sld [smem:[#allocation15_spill]] }
 0x8d4   : > { %s2049_s12 = sld [smem:[#allocation11_spill]] }
 0x8d9   : > { %p1397_p2 = scmp.ge.s32.totalorder %s2048_s22, 2 }
 0x8da   : > { %s1161_s24 = sand.u32 1, %s2049_s12  }
 0x8db   : > { %p1391_p4 = pnand %p1397_p2, %p1785_p8  ;;  %s1162_s21 = scalar_lea.sflag [#allocation6], %s1161_s24 }
 0x8dd   : > { %p1392_p5 = pneg %p1391_p4 }
 0x8df   : > { %1599 = dma.done.wait (%p1392_p5), %s1162_s21, 128  }
 0x8e0   : > { %1601 = vsyncadd (%p1392_p5), %s1162_s21, 4294967168  ;;  %s1172_s27 = scalar_lea.sflag [#allocation8], %s1161_s24 }
 0x8e1   : > { %1603 = dma.done.wait (%p1392_p5), %s1172_s27, 256  }
 0x8e2   : > { %1605 = vsyncadd (%p1392_p5), %s1172_s27, 4294967040  ;;  %s31_s20 = sadd.s32 1, %s2048_s22   ;;  %s2051_s26 = sld [smem:[#allocation12_spill]] }
 0x8e3   : > { %p28_p6 = scmp.ge.s32.totalorder %s31_s20, 6   ;;  %s2052_s15 = sld [smem:[#allocation19_spill]] }
 0x8e4   : > { %s2053_s16 = sld [smem:[#allocation13_spill]]  ;;  %s2057_s29 = smov %s1612_s30 }
 0x8e5   : > { %s2054_s17 = sld [smem:[#allocation14_spill]]  ;;  %30 = sbr.rel (!%p28_p6) target bundleno = 13 (0xd), region = 133 }
 0x8e6   : > { %s2055_s18 = sld [smem:[#allocation16_spill]] }
 0x8e7   : > { %s2056_s19 = sld [smem:[#allocation17_spill]] }
 0x8e8   : > { %s2058_s30 = smov %s2051_s26 }
 0x8ea   :  { %1178 = vsyncpa [#allocation6], 1 }
 0x8eb   :  { %1180 = vsyncpa [#allocation6 + $0x1], 1 }
 0x8ec   :  { %1181 = vsyncpa [#allocation8], 1 }
 0x8ed   :  { %1183 = vsyncpa [#allocation8 + $0x1], 1 }

</bundles_post_ra>
